<compile_context>
chip_gen: v7x
topology: tpu7x:2x2x1
jax: 0.10.0
libtpu: 0.0.40
codegen_flags: <defaults>
</compile_context>

<pallas_src>
import functools

import jax
import jax.numpy as jnp
from jax import lax
from jax.experimental import pallas as pl
from jax.experimental.pallas import tpu as pltpu


def _cnn_head_kernel(x_ref, w1_ref, b1_ref, alpha_ref, w2_ref, b2_ref, out_ref,
                     *, seq_len):
    # x_ref:     (TB*L, Cin)       VMEM (bf16 or f32)
    # w1_ref:    (3, Cin, H)       VMEM (same dtype as x)
    # b1_ref:    (1, H)            VMEM f32
    # alpha_ref: (1, 1)            SMEM f32   (single shared PReLU parameter)
    # w2_ref:    (3, H, Cout_pad)  VMEM (same dtype as x)
    # b2_ref:    (1, Cout_pad)     VMEM f32
    # out_ref:   (TB, Cout_pad)    VMEM f32
    x = x_ref[...]
    m = x.shape[0]
    L = seq_len
    tb = m // L

    # Per-batch boundary masks: rows whose "previous"/"next" row would belong to a
    # different batch element see the conv's zero padding instead.
    pos = lax.broadcasted_iota(jnp.int32, (m, 1), 0) % L
    not_first = pos != 0
    not_last = pos != (L - 1)

    def conv3(z, w_ref, b_ref):
        # z: (m, C); w_ref: (3, C, N); b_ref: (1, N) f32  ->  (m, N) f32
        z_prev = jnp.where(not_first, pltpu.roll(z, shift=1, axis=0),
                           jnp.zeros_like(z))
        z_next = jnp.where(not_last, pltpu.roll(z, shift=m - 1, axis=0),
                           jnp.zeros_like(z))
        acc = jnp.dot(z_prev, w_ref[0], preferred_element_type=jnp.float32)
        acc = acc + jnp.dot(z, w_ref[1], preferred_element_type=jnp.float32)
        acc = acc + jnp.dot(z_next, w_ref[2], preferred_element_type=jnp.float32)
        return acc + b_ref[...]

    # ---- Conv1d #1, bias + PReLU fused in f32 before any re-store ----
    y1 = conv3(x, w1_ref, b1_ref)
    a = alpha_ref[0, 0]
    y1 = jnp.where(y1 > 0, y1, a * y1).astype(x.dtype)

    # ---- Conv1d #2 ----
    y2 = conv3(y1, w2_ref, b2_ref)                     # (m, Cout_pad) f32

    # ---- max over the sequence dimension, one lane-dense store ----
    y2 = y2.reshape(tb, L, y2.shape[-1])
    out_ref[...] = jnp.max(y2, axis=1).astype(out_ref.dtype)


def cnn_head_pallas(last_hidden_state, w1_oik, b1, alpha, w2_oik, b2, *,
                    use_bf16=True, batch_tile=None):
    """CNNHead forward.

    last_hidden_state: (B, L, Cin) float32 (input BEFORE the module's permute).
    w1_oik: (H, Cin, K) PyTorch Conv1d weight layout; w2_oik: (Cout, H, K).
    Returns (B, Cout) float32.
    """
    B, L, cin = last_hidden_state.shape
    H, _, K = w1_oik.shape
    cout = w2_oik.shape[0]
    assert K == 3, "kernel specialized to kernel_size=3 (padding=1 => same length)"

    compute_dtype = jnp.bfloat16 if use_bf16 else jnp.float32

    # (O, I, K) -> (K, I, O)
    w1_k = jnp.transpose(w1_oik, (2, 1, 0)).astype(compute_dtype)
    w2_k = jnp.transpose(w2_oik, (2, 1, 0)).astype(compute_dtype)

    # Pad output channels to a lane-dense multiple of 128 (sliced off at the end).
    cout_pad = ((cout + 127) // 128) * 128
    w2_k = jnp.pad(w2_k, ((0, 0), (0, 0), (0, cout_pad - cout)))
    b2_p = jnp.pad(b2.astype(jnp.float32), (0, cout_pad - cout)).reshape(1, cout_pad)
    b1_2d = b1.astype(jnp.float32).reshape(1, H)
    alpha_2d = jnp.asarray(alpha, jnp.float32).reshape(1, 1)

    # Batch tile: target >=256 rows in the matmul M dim per grid step.
    if batch_tile is None:
        tb = max(1, 256 // max(L, 1))
        if tb >= B:
            tb = B                                   # single grid step
        else:
            tb = min(B, max(8, (tb // 8) * 8))       # multiple-of-8 batch rows
    else:
        tb = min(batch_tile, B)
    num_tiles = pl.cdiv(B, tb)

    x2d = last_hidden_state.reshape(B * L, cin).astype(compute_dtype)

    kernel = functools.partial(_cnn_head_kernel, seq_len=L)
    out_padded = pl.pallas_call(
        kernel,
        out_shape=jax.ShapeDtypeStruct((B, cout_pad), jnp.float32),
        grid_spec=pltpu.PrefetchScalarGridSpec(
            num_scalar_prefetch=0,
            grid=(num_tiles,),
            in_specs=[
                pl.BlockSpec((tb * L, cin), lambda i: (i, 0)),
                pl.BlockSpec((K, cin, H), lambda i: (0, 0, 0)),
                pl.BlockSpec((1, H), lambda i: (0, 0)),
                pl.BlockSpec(memory_space=pltpu.MemorySpace.SMEM),
                pl.BlockSpec((K, H, cout_pad), lambda i: (0, 0, 0)),
                pl.BlockSpec((1, cout_pad), lambda i: (0, 0)),
            ],
            out_specs=pl.BlockSpec((tb, cout_pad), lambda i: (i, 0)),
        ),
        compiler_params=pltpu.CompilerParams(
            dimension_semantics=("parallel",)),
    )(x2d, w1_k, b1_2d, alpha_2d, w2_k, b2_p)

    return out_padded[:, :cout]


def cnn_head_reference(x, w1_oik, b1, alpha, w2_oik, b2):
    """Pure-JAX reference mirroring the PyTorch forward (weights in (O, I, K))."""
    x_ncl = jnp.transpose(x, (0, 2, 1))                      # NLC -> NCL
    y = lax.conv_general_dilated(
        x_ncl, w1_oik, window_strides=(1,), padding=[(1, 1)],
        dimension_numbers=("NCH", "OIH", "NCH")) + b1[None, :, None]
    a = jnp.asarray(alpha).reshape(())
    y = jnp.where(y > 0, y, a * y)                           # PReLU (1 param)
    y = lax.conv_general_dilated(
        y, w2_oik, window_strides=(1,), padding=[(1, 1)],
        dimension_numbers=("NCH", "OIH", "NCH")) + b2[None, :, None]
    return jnp.max(y, axis=2)                                # (B, Cout)


if __name__ == "__main__":
    # Small shapes consistent with the module: seq=8, in_features=32,
    # hidden_size=16, out_features=8, kernel_size=3.
    B, L = 2, 8
    in_features, hidden_size, out_features, K = 32, 16, 8, 3

    key = jax.random.PRNGKey(0)
    kx, kw1, kb1, kw2, kb2 = jax.random.split(key, 5)

    x = jax.random.normal(kx, (B, L, in_features), dtype=jnp.float32)
    w1 = 0.1 * jax.random.normal(kw1, (hidden_size, in_features, K), jnp.float32)
    b1 = 0.1 * jax.random.normal(kb1, (hidden_size,), jnp.float32)
    w2 = 0.1 * jax.random.normal(kw2, (out_features, hidden_size, K), jnp.float32)
    b2 = 0.1 * jax.random.normal(kb2, (out_features,), jnp.float32)
    alpha = jnp.array([0.25], dtype=jnp.float32)             # nn.PReLU() default init

    ref = jax.block_until_ready(cnn_head_reference(x, w1, b1, alpha, w2, b2))

    # f32 path: tight structural check against the conv reference.
    out_f32 = jax.block_until_ready(
        cnn_head_pallas(x, w1, b1, alpha, w2, b2, use_bf16=False))
    assert out_f32.shape == (B, out_features)
    assert jnp.allclose(out_f32, ref, rtol=1e-4, atol=1e-4), (
        f"f32 mismatch: max abs err {jnp.max(jnp.abs(out_f32 - ref))}")

    # bf16 path (default, MXU-friendly): loose tolerance appropriate for bf16 inputs.
    out_bf16 = jax.block_until_ready(cnn_head_pallas(x, w1, b1, alpha, w2, b2))
    assert out_bf16.shape == (B, out_features)
    assert jnp.allclose(out_bf16, ref, rtol=5e-2, atol=5e-2), (
        f"bf16 mismatch: max abs err {jnp.max(jnp.abs(out_bf16 - ref))}")

    print("KERNEL_OK")
</pallas_src>

<mosaic_0001>
module attributes {stable_mosaic.version = 11 : i64} {
  func.func @_cnn_head_kernel(%arg0: i32, %arg1: memref<16x32xf32, #tpu.memory_space<vmem>>, %arg2: memref<3x32x16xf32, #tpu.memory_space<vmem>>, %arg3: memref<1x16xf32, #tpu.memory_space<vmem>>, %arg4: memref<1x1xf32, #tpu.memory_space<smem>>, %arg5: memref<3x16x128xf32, #tpu.memory_space<vmem>>, %arg6: memref<1x128xf32, #tpu.memory_space<vmem>>, %arg7: memref<2x128xf32, #tpu.memory_space<vmem>>) attributes {dimension_semantics = [#tpu.dimension_semantics<parallel>], iteration_bounds = array<i64: 1>, scalar_prefetch = 0 : i64, scratch_operands = 0 : i64, tpu.core_type = #tpu.core_type<tc>, window_params = [{transform_indices = @transform_0, window_bounds = array<i64: 16, 32>}, {pipeline_mode = #tpu.pipeline_mode<synchronous>, transform_indices = @transform_1, window_bounds = array<i64: 3, 32, 16>}, {pipeline_mode = #tpu.pipeline_mode<synchronous>, transform_indices = @transform_2, window_bounds = array<i64: 1, 16>}, {transform_indices = @transform_3, window_bounds = array<i64: 1, 1>}, {pipeline_mode = #tpu.pipeline_mode<synchronous>, transform_indices = @transform_4, window_bounds = array<i64: 3, 16, 128>}, {pipeline_mode = #tpu.pipeline_mode<synchronous>, transform_indices = @transform_5, window_bounds = array<i64: 1, 128>}, {transform_indices = @transform_6, window_bounds = array<i64: 2, 128>}]} {
    %c0 = arith.constant 0 : index
    %c0_0 = arith.constant 0 : index
    %0 = vector.load %arg1[%c0, %c0_0] : memref<16x32xf32, #tpu.memory_space<vmem>>, vector<16x32xf32>
    %1 = tpu.iota {dimensions = array<i32: 0>} : vector<16x1xi32>
    %c8_i32 = arith.constant 8 : i32
    %c0_i32 = arith.constant 0 : i32
    %2 = arith.cmpi eq, %c8_i32, %c0_i32 : i32
    %c1_i32 = arith.constant 1 : i32
    %3 = arith.select %2, %c1_i32, %c8_i32 : i32
    %4 = vector.broadcast %3 : i32 to vector<16x1xi32>
    %5 = arith.remsi %1, %4 : vector<16x1xi32>
    %c0_i32_1 = arith.constant 0 : i32
    %6 = vector.broadcast %c0_i32_1 : i32 to vector<16x1xi32>
    %7 = arith.cmpi ne, %5, %6 : vector<16x1xi32>
    %c0_i32_2 = arith.constant 0 : i32
    %8 = vector.broadcast %c0_i32_2 : i32 to vector<16x1xi32>
    %9 = arith.cmpi slt, %5, %8 : vector<16x1xi32>
    %c0_i32_3 = arith.constant 0 : i32
    %10 = arith.cmpi slt, %3, %c0_i32_3 : i32
    %11 = vector.broadcast %10 : i1 to vector<16x1xi1>
    %12 = vector.broadcast %11 : vector<16x1xi1> to vector<16x1xi1>
    %13 = arith.xori %9, %12 : vector<16x1xi1>
    %14 = arith.andi %13, %7 : vector<16x1xi1>
    %15 = vector.broadcast %3 : i32 to vector<16x1xi32>
    %16 = arith.addi %5, %15 : vector<16x1xi32>
    %17 = arith.select %14, %16, %5 : vector<16x1xi1>, vector<16x1xi32>
    %c0_i32_4 = arith.constant 0 : i32
    %18 = vector.broadcast %c0_i32_4 : i32 to vector<16x1xi32>
    %19 = arith.cmpi ne, %17, %18 : vector<16x1xi32>
    %c7_i32 = arith.constant 7 : i32
    %20 = vector.broadcast %c7_i32 : i32 to vector<16x1xi32>
    %21 = arith.cmpi ne, %17, %20 : vector<16x1xi32>
    %c1_i32_5 = arith.constant 1 : i32
    %22 = tpu.dynamic_rotate %0 by %c1_i32_5 dim 0 : vector<16x32xf32>, i32 -> vector<16x32xf32>
    %cst = arith.constant 0.000000e+00 : f32
    %23 = vector.broadcast %cst : f32 to vector<16x32xf32>
    %24 = vector.shape_cast %19 : vector<16x1xi1> to vector<16x1xi1>
    %25 = vector.broadcast %24 : vector<16x1xi1> to vector<16x32xi1>
    %26 = arith.select %25, %22, %23 : vector<16x32xi1>, vector<16x32xf32>
    %c15_i32 = arith.constant 15 : i32
    %27 = tpu.dynamic_rotate %0 by %c15_i32 dim 0 : vector<16x32xf32>, i32 -> vector<16x32xf32>
    %cst_6 = arith.constant 0.000000e+00 : f32
    %28 = vector.broadcast %cst_6 : f32 to vector<16x32xf32>
    %29 = vector.shape_cast %21 : vector<16x1xi1> to vector<16x1xi1>
    %30 = vector.broadcast %29 : vector<16x1xi1> to vector<16x32xi1>
    %31 = arith.select %30, %27, %28 : vector<16x32xi1>, vector<16x32xf32>
    %c0_7 = arith.constant 0 : index
    %c0_8 = arith.constant 0 : index
    %c0_9 = arith.constant 0 : index
    %32 = vector.load %arg2[%c0_7, %c0_8, %c0_9] : memref<3x32x16xf32, #tpu.memory_space<vmem>>, vector<1x32x16xf32>
    %33 = vector.shape_cast %32 : vector<1x32x16xf32> to vector<32x16xf32>
    %cst_10 = arith.constant dense<0.000000e+00> : vector<16x16xf32>
    %34 = tpu.matmul %26, %33, %cst_10 {dimension_numbers = #tpu.dot_dimension_numbers<[1], [0], [0], [1], [0, 0, 1, 1], [], []>} : vector<16x32xf32>, vector<32x16xf32>, vector<16x16xf32> -> vector<16x16xf32>
    %c1 = arith.constant 1 : index
    %c0_11 = arith.constant 0 : index
    %c0_12 = arith.constant 0 : index
    %35 = vector.load %arg2[%c1, %c0_11, %c0_12] : memref<3x32x16xf32, #tpu.memory_space<vmem>>, vector<1x32x16xf32>
    %36 = vector.shape_cast %35 : vector<1x32x16xf32> to vector<32x16xf32>
    %cst_13 = arith.constant dense<0.000000e+00> : vector<16x16xf32>
    %37 = tpu.matmul %0, %36, %cst_13 {dimension_numbers = #tpu.dot_dimension_numbers<[1], [0], [0], [1], [0, 0, 1, 1], [], []>} : vector<16x32xf32>, vector<32x16xf32>, vector<16x16xf32> -> vector<16x16xf32>
    %38 = arith.addf %34, %37 : vector<16x16xf32>
    %c2 = arith.constant 2 : index
    %c0_14 = arith.constant 0 : index
    %c0_15 = arith.constant 0 : index
    %39 = vector.load %arg2[%c2, %c0_14, %c0_15] : memref<3x32x16xf32, #tpu.memory_space<vmem>>, vector<1x32x16xf32>
    %40 = vector.shape_cast %39 : vector<1x32x16xf32> to vector<32x16xf32>
    %cst_16 = arith.constant dense<0.000000e+00> : vector<16x16xf32>
    %41 = tpu.matmul %31, %40, %cst_16 {dimension_numbers = #tpu.dot_dimension_numbers<[1], [0], [0], [1], [0, 0, 1, 1], [], []>} : vector<16x32xf32>, vector<32x16xf32>, vector<16x16xf32> -> vector<16x16xf32>
    %42 = arith.addf %38, %41 : vector<16x16xf32>
    %c0_17 = arith.constant 0 : index
    %c0_18 = arith.constant 0 : index
    %43 = vector.load %arg3[%c0_17, %c0_18] : memref<1x16xf32, #tpu.memory_space<vmem>>, vector<1x16xf32>
    %44 = vector.broadcast %43 : vector<1x16xf32> to vector<16x16xf32>
    %45 = arith.addf %42, %44 : vector<16x16xf32>
    %c0_19 = arith.constant 0 : index
    %c0_20 = arith.constant 0 : index
    %46 = memref.load %arg4[%c0_19, %c0_20] : memref<1x1xf32, #tpu.memory_space<smem>>
    %cst_21 = arith.constant 0.000000e+00 : f32
    %47 = vector.broadcast %cst_21 : f32 to vector<16x16xf32>
    %48 = arith.cmpf ogt, %45, %47 : vector<16x16xf32>
    %49 = vector.broadcast %46 : f32 to vector<16x16xf32>
    %50 = arith.mulf %49, %45 : vector<16x16xf32>
    %51 = arith.select %48, %45, %50 : vector<16x16xi1>, vector<16x16xf32>
    %c1_i32_22 = arith.constant 1 : i32
    %52 = tpu.dynamic_rotate %51 by %c1_i32_22 dim 0 : vector<16x16xf32>, i32 -> vector<16x16xf32>
    %cst_23 = arith.constant 0.000000e+00 : f32
    %53 = vector.broadcast %cst_23 : f32 to vector<16x16xf32>
    %54 = vector.shape_cast %19 : vector<16x1xi1> to vector<16x1xi1>
    %55 = vector.broadcast %54 : vector<16x1xi1> to vector<16x16xi1>
    %56 = arith.select %55, %52, %53 : vector<16x16xi1>, vector<16x16xf32>
    %c15_i32_24 = arith.constant 15 : i32
    %57 = tpu.dynamic_rotate %51 by %c15_i32_24 dim 0 : vector<16x16xf32>, i32 -> vector<16x16xf32>
    %cst_25 = arith.constant 0.000000e+00 : f32
    %58 = vector.broadcast %cst_25 : f32 to vector<16x16xf32>
    %59 = vector.shape_cast %21 : vector<16x1xi1> to vector<16x1xi1>
    %60 = vector.broadcast %59 : vector<16x1xi1> to vector<16x16xi1>
    %61 = arith.select %60, %57, %58 : vector<16x16xi1>, vector<16x16xf32>
    %c0_26 = arith.constant 0 : index
    %c0_27 = arith.constant 0 : index
    %c0_28 = arith.constant 0 : index
    %62 = vector.load %arg5[%c0_26, %c0_27, %c0_28] : memref<3x16x128xf32, #tpu.memory_space<vmem>>, vector<1x16x128xf32>
    %63 = vector.shape_cast %62 : vector<1x16x128xf32> to vector<16x128xf32>
    %cst_29 = arith.constant dense<0.000000e+00> : vector<16x128xf32>
    %64 = tpu.matmul %56, %63, %cst_29 {dimension_numbers = #tpu.dot_dimension_numbers<[1], [0], [0], [1], [0, 0, 1, 1], [], []>} : vector<16x16xf32>, vector<16x128xf32>, vector<16x128xf32> -> vector<16x128xf32>
    %c1_30 = arith.constant 1 : index
    %c0_31 = arith.constant 0 : index
    %c0_32 = arith.constant 0 : index
    %65 = vector.load %arg5[%c1_30, %c0_31, %c0_32] : memref<3x16x128xf32, #tpu.memory_space<vmem>>, vector<1x16x128xf32>
    %66 = vector.shape_cast %65 : vector<1x16x128xf32> to vector<16x128xf32>
    %cst_33 = arith.constant dense<0.000000e+00> : vector<16x128xf32>
    %67 = tpu.matmul %51, %66, %cst_33 {dimension_numbers = #tpu.dot_dimension_numbers<[1], [0], [0], [1], [0, 0, 1, 1], [], []>} : vector<16x16xf32>, vector<16x128xf32>, vector<16x128xf32> -> vector<16x128xf32>
    %68 = arith.addf %64, %67 : vector<16x128xf32>
    %c2_34 = arith.constant 2 : index
    %c0_35 = arith.constant 0 : index
    %c0_36 = arith.constant 0 : index
    %69 = vector.load %arg5[%c2_34, %c0_35, %c0_36] : memref<3x16x128xf32, #tpu.memory_space<vmem>>, vector<1x16x128xf32>
    %70 = vector.shape_cast %69 : vector<1x16x128xf32> to vector<16x128xf32>
    %cst_37 = arith.constant dense<0.000000e+00> : vector<16x128xf32>
    %71 = tpu.matmul %61, %70, %cst_37 {dimension_numbers = #tpu.dot_dimension_numbers<[1], [0], [0], [1], [0, 0, 1, 1], [], []>} : vector<16x16xf32>, vector<16x128xf32>, vector<16x128xf32> -> vector<16x128xf32>
    %72 = arith.addf %68, %71 : vector<16x128xf32>
    %c0_38 = arith.constant 0 : index
    %c0_39 = arith.constant 0 : index
    %73 = vector.load %arg6[%c0_38, %c0_39] : memref<1x128xf32, #tpu.memory_space<vmem>>, vector<1x128xf32>
    %74 = vector.broadcast %73 : vector<1x128xf32> to vector<16x128xf32>
    %75 = arith.addf %72, %74 : vector<16x128xf32>
    %76 = vector.shape_cast %75 : vector<16x128xf32> to vector<2x8x128xf32>
    %cst_40 = arith.constant dense<0xFF800000> : vector<2x128xf32>
    %77 = vector.multi_reduction <maximumf>, %76, %cst_40 [1] : vector<2x8x128xf32> to vector<2x128xf32>
    %c0_41 = arith.constant 0 : index
    %c0_42 = arith.constant 0 : index
    %78 = vector.load %arg7[%c0_41, %c0_42] : memref<2x128xf32, #tpu.memory_space<vmem>>, vector<2x128xf32>
    tpu.vector_store %arg7[%c0_41, %c0_42], %77 {strides = array<i32>} : memref<2x128xf32, #tpu.memory_space<vmem>>, vector<2x128xf32>,
    return
  }
  func.func @transform_0(%arg0: i32) -> (i32, i32) {
    %c0_i32 = arith.constant 0 : i32
    %c0_i32_0 = arith.constant 0 : i32
    return %arg0, %c0_i32 : i32, i32
  }
  func.func @transform_1(%arg0: i32) -> (i32, i32, i32) {
    %c0_i32 = arith.constant 0 : i32
    %c0_i32_0 = arith.constant 0 : i32
    %c0_i32_1 = arith.constant 0 : i32
    %c0_i32_2 = arith.constant 0 : i32
    return %c0_i32, %c0_i32_0, %c0_i32_1 : i32, i32, i32
  }
  func.func @transform_2(%arg0: i32) -> (i32, i32) {
    %c0_i32 = arith.constant 0 : i32
    %c0_i32_0 = arith.constant 0 : i32
    %c0_i32_1 = arith.constant 0 : i32
    return %c0_i32, %c0_i32_0 : i32, i32
  }
  func.func @transform_3(%arg0: i32) -> (i32, i32) {
    %c0_i32 = arith.constant 0 : i32
    %c0_i32_0 = arith.constant 0 : i32
    %c0_i32_1 = arith.constant 0 : i32
    return %c0_i32, %c0_i32_0 : i32, i32
  }
  func.func @transform_4(%arg0: i32) -> (i32, i32, i32) {
    %c0_i32 = arith.constant 0 : i32
    %c0_i32_0 = arith.constant 0 : i32
    %c0_i32_1 = arith.constant 0 : i32
    %c0_i32_2 = arith.constant 0 : i32
    return %c0_i32, %c0_i32_0, %c0_i32_1 : i32, i32, i32
  }
  func.func @transform_5(%arg0: i32) -> (i32, i32) {
    %c0_i32 = arith.constant 0 : i32
    %c0_i32_0 = arith.constant 0 : i32
    %c0_i32_1 = arith.constant 0 : i32
    return %c0_i32, %c0_i32_0 : i32, i32
  }
  func.func @transform_6(%arg0: i32) -> (i32, i32) {
    %c0_i32 = arith.constant 0 : i32
    %c0_i32_0 = arith.constant 0 : i32
    return %arg0, %c0_i32 : i32, i32
  }
}

</mosaic_0001>

<bundles_post_ra>
// kernel: tpu_custom_call.1
= control target key start
LH: loop header
LB: loop body
LE: loop exit
PB: predicated region body
PF: predicated region fallthrough
CT: control target
= control target key end

     0   :  { %v27_v3 = vlaneseq  ;;  %vm89_vm0 = vcmask 261120   ;;  %s1026_s0 = inlined_call_operand.vmem [shape: f32[16,32], index: 0, kind: input, shape index: {}]   ;;  %s1027_s1 = inlined_call_operand.vmem [shape: f32[3,32,16], index: 1, kind: input, shape index: {}]   ;;  %s1028_s2 = inlined_call_operand.vmem [shape: f32[1,16], index: 2, kind: input, shape index: {}]   ;;  %s1029_s3 = inlined_call_operand.<no memory space> [shape: f32[1,1], index: 3, kind: input, shape index: {}]   ;;  %s1030_s4 = inlined_call_operand.vmem [shape: f32[3,16,128], index: 4, kind: input, shape index: {}]   ;;  %s1031_s5 = inlined_call_operand.vmem [shape: f32[1,128], index: 5, kind: input, shape index: {}]   ;;  %s1032_s6 = inlined_call_operand.hbm [shape: f32[2,128], index: 6, kind: output, shape index: {}]  }
   0x1   :  { %v80_v0 = vld [vmem:[%s1027_s1] sm:$0xff]  ;;  %v81_v1 = vld [vmem:[%s1027_s1 + $0x8] sm:$0xff]  ;;  %v82_v2 = vld [vmem:[%s1027_s1 + $0x10] sm:$0xff] }
   0x2   :  { %v782_v4 = vpack.c.bf16 %v81_v1, %v80_v0  ;;  %v83_v5 = vld [vmem:[%s1027_s1 + $0x18] sm:$0xff]  ;;  %v25_v6 = vld [vmem:[%s1026_s0] sm:$0xff]  ;;  %v26_v7 = vld [vmem:[%s1026_s0 + $0x8] sm:$0xff]  ;;  %v897_v9 = vshrl.u32 %v27_v3, 7 }
   0x3   :  { %v786_v8 = vpack.c.bf16 %v83_v5, %v82_v2  ;;  %v58_v10 = vrot.slane %v25_v6, 7  ;;  %v59_v11 = vrot.slane %v26_v7, 7  ;;  %v664_v12 = vld [vmem:[%s1027_s1 + $0x20] sm:$0xff]  ;;  %v665_v13 = vld [vmem:[%s1027_s1 + $0x28] sm:$0xff]  ;;  %728 = vmatprep.mubr.msk.f32.mxu1 %vm89_vm0, %v25_v6  ;;  %v666_v17 = vld [vmem:[%s1027_s1 + $0x30] sm:$0xff]  ;;  %v69_v19 = vrot.slane %v25_v6, 1 }
   0x4   :  { %v672_v14 = vld [vmem:[%s1027_s1 + $0x40] sm:$0xff]  ;;  %783 = vmatprep.subr.bf16.mxu0 %v782_v4  ;;  %v774_v15 = vpack.c.bf16 %v665_v13, %v664_v12  ;;  %v673_v16 = vld [vmem:[%s1027_s1 + $0x48] sm:$0xff]  ;;  %v667_v18 = vld [vmem:[%s1027_s1 + $0x38] sm:$0xff]  ;;  %v70_v20 = vrot.slane %v26_v7, 1  ;;  %v34_v21 = vand.u32 7, %v897_v9  ;;  %vm60_vm1 = vcmp.lt.s32.totalorder %v897_v9, 1 }
   0x5   :  { %785 = vmatpush3.bf16.msra.mxu0 %v782_v4  ;;  %v29_v22 = vadd.s32 8, %v897_v9  ;;  %v62_v23 = vsel %vm60_vm1, %v59_v11, %v58_v10  ;;  %v790_v24 = vpack.c.bf16 %v673_v16, %v672_v14  ;;  %v778_v25 = vpack.c.bf16 %v667_v18, %v666_v17 }
   0x6   :  { %787 = vmatprep.subr.bf16.mxu0 %v786_v8  ;;  %775 = vmatprep.subr.bf16.mxu1 %v774_v15  ;;  %vm71_vm2 = vcmp.lt.s32.totalorder %v897_v9, 7 }
   0x7   :  { %12 = vsyncpa [#allocation4], 0  ;;  %vm924_vm3 = vcmp.ne.s32.totalorder %v34_v21, 0  ;;  %v41_v27 = vand.u32 7, %v29_v22  ;;  %v61_v28 = vsel %vm60_vm1, %v58_v10, %v59_v11  ;;  %777 = vmatpush3.bf16.msra.mxu1 %v774_v15  ;;  %v674_v29 = vld [vmem:[%s1027_s1 + $0x50] sm:$0xff]  ;;  %v675_v30 = vld [vmem:[%s1027_s1 + $0x58] sm:$0xff]  ;;  %v72_v33 = vsel %vm71_vm2, %v69_v19, %v70_v20 }
   0x8   :  { %vm936_vm4 = vcmp.ne.s32.totalorder %v34_v21, 7  ;;  %v67_v32 = vsel %vm924_vm3, %v62_v23, 0.0  ;;  %779 = vmatprep.subr.bf16.mxu1 %v778_v25  ;;  %v794_v36 = vpack.c.bf16 %v675_v30, %v674_v29  ;;  %v73_v39 = vsel %vm71_vm2, %v70_v20, %v69_v19  ;;  %v679_v41 = vld [vmem:[%s1030_s4 + $0x10] sm:$0xff]  ;;  %v680_v42 = vld [vmem:[%s1030_s4 + $0x18] sm:$0xff]  ;;  %v369_v44 = vld [vmem:[%s1030_s4] sm:$0xff] }
   0x9   :  { %789 = vmatpush3.bf16.msra.mxu0 %v786_v8  ;;  %739 = vmatprep.mubr.msk.f32.mxu0 %vm89_vm0, %v67_v32  ;;  %vm945_vm5 = vcmp.ne.s32.totalorder %v41_v27, 0  ;;  %v78_v37 = vsel %vm936_vm4, %v72_v33, 0.0  ;;  %vm956_vm6 = vcmp.ne.s32.totalorder %v41_v27, 7  ;;  %v798_v43 = vpack.c.bf16 %v680_v42, %v679_v41  ;;  %v370_v45 = vld [vmem:[%s1030_s4 + $0x8] sm:$0xff]  ;;  %v678_v50 = vld [vmem:[%s1028_s2] ss:$0 sm:$0xff] }
   0xa   :  { %v68_v35 = vsel %vm945_vm5, %v61_v28, 0.0  ;;  %791 = vmatprep.subr.bf16.mxu0 %v790_v24  ;;  %v79_v40 = vsel %vm956_vm6, %v73_v39, 0.0  ;;  %v802_v46 = vpack.c.bf16 %v370_v45, %v369_v44  ;;  %v352_v53 = vstv %s1029_s3  ;;  %v685_v58 = vld [vmem:[%s1030_s4 + $0x20] sm:$0xff]  ;;  %v686_v59 = vld [vmem:[%s1030_s4 + $0x28] sm:$0xff]  ;;  %s843_s4 = smov [#allocation3]  }
   0xb   :  { %781 = vmatpush3.bf16.msra.mxu1 %v778_v25  ;;  %vm374_vm9 = vcmask 130048   ;;  %v806_v1 = vpack.c.bf16 %v686_v59, %v685_v58  ;;  %v689_v12 = vld [vmem:[%s1031_s5] ss:$0 sm:$0xff]  ;;  %s656_s0 = sshll.u32 %s843_s4, 4  ;;  %vm646_vm10 = vcmask 1041409   ;;  %s657_s0 = int_to_ptr.vmem [resolvable:$true] %s656_s0 }
   0xc   :  { %740 = vmatmul.mubr.msk.f32.vlgmr.msra.gmra.mrb[0].mxu0 %vm89_vm0, %v68_v35  ;;  %799 = vmatprep.subr.bf16.mxu1 %v798_v43  ;;  %s819_s5 = scalar_lea.vmem %s657_s0, 32  ;;  %p824_p1 = scmp.lt.s32.totalorder %s657_s0, %s657_s0 }
   0xd   :  { %793 = vmatpush3.bf16.msra.mxu0 %v790_v24  ;;  %750 = vmatprep.mubr.msk.f32.mxu0 %vm89_vm0, %v78_v37  ;;  %p820_p0 = scmp.ne.s32.totalorder %s657_s0, %s819_s5  ;;  %p825_p2 = scmp.lt.s32.totalorder %s819_s5, %s819_s5 }
   0xe   :  { %795 = vmatprep.subr.bf16.mxu0 %v794_v36  ;;  %729 = vmatmul.mubr.msk.f32.vlgmr.msra.gmra.mrb[0].mxu1 %vm89_vm0, %v26_v7 }
   0xf   :  { %801 = vmatpush3.bf16.msra.mxu1 %v798_v43  ;;  %p826_p3 = por %p825_p2, %p824_p1 }
  0x10   :  { %803 = vmatprep.subr.bf16.mxu1 %v802_v46 }
  0x11   :  { %797 = vmatpush3.bf16.msra.mxu0 %v794_v36  ;;  %p827_p4 = pnand %p826_p3, %p820_p0 }
  0x14   :  { %751 = vmatmul.mubr.msk.f32.vlgmr.msra.gmra.mrb[0].mxu0 %vm89_vm0, %v79_v40 }
  0xe1   :  { %v730_v47 = vpop.f32.mrb[0].mxu1 }
  0xe2   :  { %v162_v48 = vpop.f32.mrb[1].mxu1 }
  0xe7   :  { %v752_v49 = vpop.f32.mrb[0].mxu0 }
  0xe8   :  { %v810_v51 = vadd.f32 %v752_v49, %v730_v47  ;;  %v329_v52 = vpop.f32.mrb[1].mxu0 }
  0xe9   :  { %v811_v54 = vadd.f32 %v329_v52, %v162_v48 }
  0xea   :  { %v348_v55 = vadd.f32 %v810_v51, %v678_v50 }
  0xeb   :  { %v347_v56 = vadd.f32 %v811_v54, %v678_v50 }
  0xec   :  { %vm351_vm7 = vcmp.gt.f32.partialorder %v348_v55, 0.0  ;;  %v354_v57 = vmul.f32 %v352_v53, %v348_v55 }
  0xed   :  { %v353_v60 = vmul.f32 %v352_v53, %v347_v56  ;;  %vm350_vm8 = vcmp.gt.f32.partialorder %v347_v56, 0.0 }
  0xee   :  { %v356_v61 = vsel %vm351_vm7, %v348_v55, %v354_v57 }
  0xef   :  { %v355_v62 = vsel %vm350_vm8, %v347_v56, %v353_v60  ;;  %v358_v63 = vrot.slane %v356_v61, 7  ;;  %v364_v0 = vrot.slane %v356_v61, 1 }
  0xf0   :  { %v357_v2 = vrot.slane %v355_v62, 7  ;;  %v363_v3 = vrot.slane %v355_v62, 1  ;;  %757 = vmatprep.mubr.msk.f32.mxu1 %vm374_vm9, %v355_v62 }
  0xf1   :  { %758 = vmatmul.mubr.msk.f32.vlgmr.msra.gmra.mrb[2].mxu1 %vm374_vm9, %v356_v61 }
  0xf2   :  { %805 = vmatpush3.bf16.msra.mxu1 %v802_v46  ;;  %v360_v4 = vsel %vm60_vm1, %v358_v63, %v357_v2  ;;  %v359_v5 = vsel %vm60_vm1, %v357_v2, %v358_v63  ;;  %v365_v6 = vsel %vm71_vm2, %v363_v3, %v364_v0  ;;  %v366_v7 = vsel %vm71_vm2, %v364_v0, %v363_v3 }
  0xf3   :  { %v361_v8 = vsel %vm924_vm3, %v360_v4, 0.0  ;;  %807 = vmatprep.subr.bf16.mxu1 %v806_v1  ;;  %v362_v10 = vsel %vm945_vm5, %v359_v5, 0.0  ;;  %v367_v11 = vsel %vm936_vm4, %v365_v6, 0.0  ;;  %v368_v9 = vsel %vm956_vm6, %v366_v7, 0.0 }
  0xf4   :  { %764 = vmatprep.mubr.msk.f32.mxu1 %vm374_vm9, %v361_v8 }
  0xf9   :  { %765 = vmatmul.mubr.msk.f32.vlgmr.msra.gmra.mrb[2].mxu1 %vm374_vm9, %v362_v10 }
  0xfa   :  { %809 = vmatpush3.bf16.msra.mxu1 %v806_v1  ;;  %771 = vmatprep.mubr.msk.f32.mxu1 %vm374_vm9, %v367_v11 }
 0x101   :  { %772 = vmatmul.mubr.msk.f32.vlgmr.msra.gmra.mrb[2].mxu1 %vm374_vm9, %v368_v9 }
 0x1d4   :  { %v773_v13 = vpop.f32.mrb[2].mxu1 }
 0x1d5   :  { %v631_v14 = vadd.f32 %v773_v13, %v689_v12  ;;  %v612_v15 = vpop.f32.mrb[3].mxu1 }
 0x1d6   :  { %v630_v16 = vadd.f32 %v689_v12, %v612_v15 }
 0x1d7   :  { %v638_v17 = vrot.slane %v631_v14, 4 }
 0x1d8   :  { %v632_v18 = vrot.slane %v630_v16, 4 }
 0x1d9   :  { %v639_v19 = vmax.f32 %v631_v14, %v638_v17 }
 0x1da   :  { %v633_v20 = vmax.f32 %v630_v16, %v632_v18 }
 0x1db   :  { %v640_v21 = vrot.slane %v639_v19, 2 }
 0x1dc   :  { %v634_v22 = vrot.slane %v633_v20, 2 }
 0x1dd   :  { %v641_v23 = vmax.f32 %v639_v19, %v640_v21 }
 0x1de   :  { %v635_v24 = vmax.f32 %v633_v20, %v634_v22 }
 0x1df   :  { %v642_v25 = vrot.slane %v641_v23, 1 }
 0x1e0   :  { %v636_v26 = vrot.slane %v635_v24, 1 }
 0x1e1   :  { %v643_v27 = vmax.f32 %v641_v23, %v642_v25 }
 0x1e2   :  { %v637_v28 = vmax.f32 %v635_v24, %v636_v26 }
 0x1e4   :  { %v647_v29 = vsel %vm646_vm10, %v643_v27, %v637_v28 }
 0x1e5   :  { %649 = vst [vmem:[#allocation3] sm:$0x3] %v647_v29 }
 0x1e6   :  { %830 = shalt.err (!%p827_p4)
}
 0x1e7   :  { %s831_s17 = scalar_lea.hbm %s1032_s6, 32 }
 0x1e8   :  { %p832_p5 = scmp.ne.s32.totalorder %s1032_s6, %s831_s17  ;;  %p835_p6 = scmp.lt.u32.totalorder %s831_s17, %s1032_s6 }
 0x1ea   :  { %p837_p7 = pnand %p835_p6, %p832_p5 }
 0x1ec   :  { %840 = shalt.err (!%p837_p7)
}
 0x1ed   :  { %659 = dma.vmem_to_hbm [thread:$0]  %s657_s0, 32, %s1032_s6, [#allocation4]  }
 0x1ee   :  { %841 = dma.done.wait [#allocation4], 32  }
 0x1ef   :  { %842 = vsyncadd [#allocation4], 4294967264 }
 0x1f0   :  { %663 = vsyncpa [#allocation4], 1 }

</bundles_post_ra>
